<compile_context>
chip_gen: v6e
topology: v6e:2x2x1
jax: 0.10.0
libtpu: 0.0.40
codegen_flags: <defaults>
</compile_context>

<pallas_src>
import functools
import math

import jax
import jax.numpy as jnp
from jax.experimental import pallas as pl
from jax.experimental.pallas import tpu as pltpu


def _round_up(x, m):
    return (x + m - 1) // m * m


# ----------------------------------------------------------------------------
# Pallas kernel: fused (w @ x + b) -> activation, NCHW-native (HW on lanes)
# ----------------------------------------------------------------------------
def _outconv_kernel(x_ref, w_ref, b_ref, o_ref, *, act):
    """x_ref: (1, Cin, t_hw), w_ref: (Cout, Cin), b_ref: (Cout, 1),
    o_ref: (1, Cout, t_hw).  o = act(w @ x + b), act over the channel axis."""
    x = x_ref[0]                                          # (Cin, t_hw)
    y = jnp.dot(w_ref[...], x,
                preferred_element_type=jnp.float32)       # (Cout, t_hw) on MXU
    y = y + b_ref[...]                                    # bias broadcast over lanes
    if act == "softmax":
        # torch Softmax(dim=1): reduce over the channel (sublane) axis.
        m = jnp.max(y, axis=0, keepdims=True)
        e = jnp.exp(y - m)
        s = jnp.sum(e, axis=0, keepdims=True)
        y = e * (1.0 / s)            # one reciprocal row, then cheap VPU multiply
    elif act == "sigmoid":
        y = jax.nn.sigmoid(y)
    else:
        raise ValueError(f"unsupported activation: {act!r}")
    o_ref[0] = y.astype(o_ref.dtype)


# ----------------------------------------------------------------------------
# Wrapper
# ----------------------------------------------------------------------------
def out_conv(x_nchw, w, b, activation):
    """OutConv forward.

    Args:
      x_nchw:     (B, Cin, H, W) float32 input (PyTorch NCHW convention).
      w:          (Cout, Cin) 1x1-conv weight (== torch conv.weight[:, :, 0, 0]).
      b:          (Cout,) conv bias.
      activation: "sigmoid" or "softmax" (softmax over the channel dim).

    Returns:
      (B, Cout, H, W) float32.
    """
    if activation not in ("sigmoid", "softmax"):
        raise ValueError(f"unsupported activation: {activation!r}")

    B, Cin, H, W = x_nchw.shape
    Cout = w.shape[0]
    HW = H * W

    x3 = x_nchw.reshape(B, Cin, HW)               # free reshape, no transpose
    w2 = w.astype(jnp.float32)
    b2 = b.astype(jnp.float32).reshape(Cout, 1)

    # Lane tile over HW: multiple of 128 (or full extent when HW < 128).
    if HW <= 128:
        t_hw = HW
    else:
        t_hw = min(2048, (HW // 128) * 128)
        # v7x megacore: guarantee >= 2 parallel grid tiles when B == 1.
        if B == 1 and pl.cdiv(HW, t_hw) < 2 and HW >= 256:
            t_hw = max(128, _round_up(pl.cdiv(HW, 2), 128))

    grid = (B, pl.cdiv(HW, t_hw))

    kernel = functools.partial(_outconv_kernel, act=activation)
    y = pl.pallas_call(
        kernel,
        out_shape=jax.ShapeDtypeStruct((B, Cout, HW), jnp.float32),
        grid_spec=pltpu.PrefetchScalarGridSpec(
            num_scalar_prefetch=0,
            grid=grid,
            in_specs=[
                pl.BlockSpec((1, Cin, t_hw), lambda bi, j: (bi, 0, j)),  # x tile
                pl.BlockSpec((Cout, Cin), lambda bi, j: (0, 0)),         # full weight
                pl.BlockSpec((Cout, 1), lambda bi, j: (0, 0)),           # bias column
            ],
            out_specs=pl.BlockSpec((1, Cout, t_hw), lambda bi, j: (bi, 0, j)),
        ),
        compiler_params=pltpu.CompilerParams(
            dimension_semantics=("parallel", "parallel"),  # B and HW tiles across TCs
        ),
    )(x3, w2, b2)

    return y.reshape(B, Cout, H, W)


# ----------------------------------------------------------------------------
# Pure-JAX reference (for correctness check)
# ----------------------------------------------------------------------------
def out_conv_ref(x_nchw, w, b, activation):
    y = jnp.einsum("bchw,dc->bdhw", x_nchw, w) + b[None, :, None, None]
    if activation == "softmax":
        return jax.nn.softmax(y, axis=1)
    return jax.nn.sigmoid(y)


# ----------------------------------------------------------------------------
if __name__ == "__main__":
    key = jax.random.PRNGKey(0)
    B, H, W = 2, 16, 16
    in_ch = 64
    # The two OutConv flavours used by SSAP: class head (softmax over n_classes)
    # and affinity head (sigmoid over aff_r**2 channels).
    configs = [("softmax", 3), ("sigmoid", 9)]

    all_ok = True
    for i, (act, out_ch) in enumerate(configs):
        k1, k2, k3 = jax.random.split(jax.random.fold_in(key, i), 3)
        x = jax.random.normal(k1, (B, in_ch, H, W), jnp.float32)
        w = jax.random.normal(k2, (out_ch, in_ch), jnp.float32) / math.sqrt(in_ch)
        b = jax.random.normal(k3, (out_ch,), jnp.float32) * 0.02

        y = jax.block_until_ready(out_conv(x, w, b, act))
        y_ref = out_conv_ref(x, w, b, act)

        assert y.shape == (B, out_ch, H, W), (y.shape, (B, out_ch, H, W))
        assert bool(jnp.all(jnp.isfinite(y)))
        assert bool(jnp.all((y >= 0.0) & (y <= 1.0)))
        if act == "softmax":
            assert bool(jnp.allclose(jnp.sum(y, axis=1), 1.0, atol=1e-5))
        # f32 matmuls at default precision run as bf16 MXU passes (both in the
        # kernel and potentially in the XLA reference); outputs are bounded in
        # [0,1], so compare with an absolute tolerance covering that rounding.
        if not bool(jnp.allclose(y, y_ref, atol=2e-3, rtol=0.0)):
            all_ok = False

    if all_ok:
        print("KERNEL_OK")
</pallas_src>

<mosaic_0001>
module attributes {stable_mosaic.version = 11 : i64} {
  func.func @_outconv_kernel(%arg0: i32, %arg1: i32, %arg2: memref<1x64x256xf32, #tpu.memory_space<vmem>>, %arg3: memref<3x64xf32, #tpu.memory_space<vmem>>, %arg4: memref<3x1xf32, #tpu.memory_space<vmem>>, %arg5: memref<1x3x256xf32, #tpu.memory_space<vmem>>) attributes {dimension_semantics = [#tpu.dimension_semantics<parallel>, #tpu.dimension_semantics<parallel>], iteration_bounds = array<i64: 2, 1>, scalar_prefetch = 0 : i64, scratch_operands = 0 : i64, tpu.core_type = #tpu.core_type<tc>, window_params = [{transform_indices = @transform_0, window_bounds = array<i64: 1, 64, 256>}, {pipeline_mode = #tpu.pipeline_mode<synchronous>, transform_indices = @transform_1, window_bounds = array<i64: 3, 64>}, {pipeline_mode = #tpu.pipeline_mode<synchronous>, transform_indices = @transform_2, window_bounds = array<i64: 3, 1>}, {transform_indices = @transform_3, window_bounds = array<i64: 1, 3, 256>}]} {
    %c0 = arith.constant 0 : index
    %c0_0 = arith.constant 0 : index
    %c0_1 = arith.constant 0 : index
    %0 = vector.load %arg2[%c0, %c0_0, %c0_1] : memref<1x64x256xf32, #tpu.memory_space<vmem>>, vector<1x64x256xf32>
    %1 = vector.shape_cast %0 : vector<1x64x256xf32> to vector<64x256xf32>
    %c0_2 = arith.constant 0 : index
    %c0_3 = arith.constant 0 : index
    %2 = vector.load %arg3[%c0_2, %c0_3] : memref<3x64xf32, #tpu.memory_space<vmem>>, vector<3x64xf32>
    %cst = arith.constant dense<0.000000e+00> : vector<3x256xf32>
    %3 = tpu.matmul %2, %1, %cst {dimension_numbers = #tpu.dot_dimension_numbers<[1], [0], [0], [1], [0, 0, 1, 1], [], []>} : vector<3x64xf32>, vector<64x256xf32>, vector<3x256xf32> -> vector<3x256xf32>
    %c0_4 = arith.constant 0 : index
    %c0_5 = arith.constant 0 : index
    %4 = vector.load %arg4[%c0_4, %c0_5] : memref<3x1xf32, #tpu.memory_space<vmem>>, vector<3x1xf32>
    %5 = vector.broadcast %4 : vector<3x1xf32> to vector<3x256xf32>
    %6 = arith.addf %3, %5 : vector<3x256xf32>
    %cst_6 = arith.constant dense<0xFF800000> : vector<256xf32>
    %7 = vector.multi_reduction <maximumf>, %6, %cst_6 [0] : vector<3x256xf32> to vector<256xf32>
    %8 = vector.shape_cast %7 : vector<256xf32> to vector<1x256xf32>
    %9 = vector.broadcast %8 : vector<1x256xf32> to vector<3x256xf32>
    %10 = arith.subf %6, %9 : vector<3x256xf32>
    %11 = math.exp %10 : vector<3x256xf32>
    %cst_7 = arith.constant dense<0.000000e+00> : vector<256xf32>
    %12 = vector.multi_reduction <add>, %11, %cst_7 [0] : vector<3x256xf32> to vector<256xf32>
    %13 = vector.shape_cast %12 : vector<256xf32> to vector<1x256xf32>
    %cst_8 = arith.constant 1.000000e+00 : f32
    %14 = vector.broadcast %cst_8 : f32 to vector<1x256xf32>
    %15 = arith.divf %14, %13 : vector<1x256xf32>
    %16 = vector.broadcast %15 : vector<1x256xf32> to vector<3x256xf32>
    %17 = arith.mulf %11, %16 : vector<3x256xf32>
    %c0_9 = arith.constant 0 : index
    %c0_10 = arith.constant 0 : index
    %c0_11 = arith.constant 0 : index
    %18 = vector.load %arg5[%c0_9, %c0_10, %c0_11] : memref<1x3x256xf32, #tpu.memory_space<vmem>>, vector<1x3x256xf32>
    %19 = vector.shape_cast %18 : vector<1x3x256xf32> to vector<3x256xf32>
    %20 = vector.shape_cast %17 : vector<3x256xf32> to vector<1x3x256xf32>
    tpu.vector_store %arg5[%c0_9, %c0_10, %c0_11], %20 {strides = array<i32>} : memref<1x3x256xf32, #tpu.memory_space<vmem>>, vector<1x3x256xf32>,
    return
  }
  func.func @transform_0(%arg0: i32, %arg1: i32) -> (i32, i32, i32) {
    %c0_i32 = arith.constant 0 : i32
    %c0_i32_0 = arith.constant 0 : i32
    return %arg0, %c0_i32, %arg1 : i32, i32, i32
  }
  func.func @transform_1(%arg0: i32, %arg1: i32) -> (i32, i32) {
    %c0_i32 = arith.constant 0 : i32
    %c0_i32_0 = arith.constant 0 : i32
    %c0_i32_1 = arith.constant 0 : i32
    return %c0_i32, %c0_i32_0 : i32, i32
  }
  func.func @transform_2(%arg0: i32, %arg1: i32) -> (i32, i32) {
    %c0_i32 = arith.constant 0 : i32
    %c0_i32_0 = arith.constant 0 : i32
    %c0_i32_1 = arith.constant 0 : i32
    return %c0_i32, %c0_i32_0 : i32, i32
  }
  func.func @transform_3(%arg0: i32, %arg1: i32) -> (i32, i32, i32) {
    %c0_i32 = arith.constant 0 : i32
    %c0_i32_0 = arith.constant 0 : i32
    return %arg0, %c0_i32, %arg1 : i32, i32, i32
  }
}

</mosaic_0001>

<bundles_post_ra>
// kernel: tpu_custom_call.1
= control target key start
LH: loop header
LB: loop body
LE: loop exit
PB: predicated region body
PF: predicated region fallthrough
CT: control target
= control target key end

     0   :  { %8 = vsyncpa [#allocation3], 0  ;;  %s771_s0 = inlined_call_operand.hbm [shape: f32[2,64,256], index: 0, kind: input, shape index: {}]   ;;  %s772_s1 = inlined_call_operand.vmem [shape: f32[3,64], index: 1, kind: input, shape index: {}]   ;;  %s773_s2 = inlined_call_operand.vmem [shape: f32[3,1], index: 2, kind: input, shape index: {}]   ;;  %s774_s3 = inlined_call_operand.vmem [shape: f32[2,3,256], index: 3, kind: output, shape index: {}]  }
   0x1   :  { %10 = vsyncpa [#allocation3 + $0x1], 0  ;;  %s647_s12 = smov 0   ;;  %s649_s13 = smov 0  }
   0x2   :  { %s651_s14 = smov 0   ;;  %s653_s15 = smov 0  }
   0x3   :  { %s655_s16 = smov 0   ;;  %s657_s17 = smov 0  }
   0x4 LB: > { %s458_s18 = sadd.s32 4294967295, %s620_s17   ;;  %s28_s19 = sadd.s32 1, %s616_s16  ;;  %s620_s17 = sphi %s657_s17, %s16_s17   ;;  %s616_s16 = sphi %s655_s16, %s782_s16   ;;  %s612_s15 = sphi %s653_s15, %s781_s15   ;;  %s608_s14 = sphi %s651_s14, %s780_s14   ;;  %s604_s13 = sphi %s649_s13, %s779_s13   ;;  %s600_s12 = sphi %s647_s12, %s778_s12  }
   0x5   : > { %p30_p0 = scmp.ge.s32.totalorder %s28_s19, 2  ;;  %s37_s20 = sadd.s32 1, %s608_s14 }
   0x6   : > { %p44_p1 = scmp.ne.s32.totalorder %s608_s14, %s604_s13  ;;  %p45_p2 = scmp.eq.s32.totalorder %s620_s17, 0 }
   0x7   : > { %s784_s19 = smov (%p30_p0, %s28_s19), 0  ;;  %p50_p4 = scmp.ne.s32.totalorder %s604_s13, %s600_s12 }
   0x8   : > { %p683_p3 = por %p45_p2, %p44_p1  ;;  %s32_s22 = ssub.s32 %s616_s16, %s784_s19 }
   0x9   : > { %p51_p5 = scmp.eq.s32.totalorder %s458_s18, 0  ;;  %p35_p6 = scmp.eq.s32.totalorder %s32_s22, 0 }
   0xa   : > { %p480_p8 = scmp.lt.s32.totalorder %s620_s17, 2  ;;  %s150_s25 = sand.u32 1, %s608_s14  }
   0xb   : > { %p690_p7 = por %p51_p5, %p50_p4  ;;  %s472_s26 = sshll.u32 %s616_s16, 11 }
   0xc   : > { %s696_s24 = scalar_select %p35_p6, %s608_s14, %s37_s20  }
   0xd   : > { %s462_s27 = sshll.u32 %s150_s25, 7  ;;  %s162_s30 = scalar_lea.hbm %s771_s0, %s472_s26 }
   0xe   : > { %s154_s4 = scalar_lea.vmem [#allocation2], %s462_s27  ;;  %p705_p9 = pnand %p480_p8, %p683_p3 }
   0xf   : > { %s163_s5 = sshll.u32 %s154_s4, 4  ;;  %s151_s7 = scalar_lea.sflag [#allocation3], %s150_s25  ;;  %s164_s5 = int_to_ptr.vmem [resolvable:$true] %s163_s5 }
  0x10   : > { %p544_p10 = pneg %p705_p9  ;;  %s555_s8 = scalar_lea.vmem %s164_s5, 2048 }
  0x11   : > { %p556_p11 = scmp.ne.s32.totalorder %s164_s5, %s555_s8  ;;  %s622_s9 = smov [#allocation2]  }
  0x12   : > { %s560_s10 = sshll.u32 %s622_s9, 4  ;;  %s561_s10 = int_to_ptr.vmem [resolvable:$false] %s560_s10 }
  0x13   : > { %p558_p12 = pnand %p556_p11, %p544_p10  ;;  %s562_s11 = scalar_lea.vmem %s561_s10, 4096 }
  0x14   : > { %p563_p0 = scmp.lt.s32.totalorder %s164_s5, %s561_s10  ;;  %p564_p1 = scmp.lt.s32.totalorder %s562_s11, %s555_s8 }
  0x15   : > { %p559_p13 = pneg %p558_p12 }
  0x16   : > { %p565_p2 = por %p564_p1, %p563_p0 }
  0x18   : > { %p566_p3 = pnand %p565_p2, %p559_p13 }
  0x1a   : > { %569 = shalt.err (!%p566_p3)
}
  0x1b   : > { %s623_s12 = smov 256   ;;  %s624_s18 = smov 16  }
  0x1c   : > { %479 = dma.hbm_to_vmem [thread:$0]  (!%p705_p9), %s162_s30, 2048, %s164_s5, %s151_s7, %s623_s12, %s623_s12, %s624_s18  }
  0x1d   : > { %p465_p4 = scmp.ge.s32.totalorder %s620_s17, 1  ;;  %p171_p5 = scmp.lt.s32.totalorder %s620_s17, 3 }
  0x1f   : > { %p172_p6 = pnand %p465_p4, %p171_p5 }
  0x20   : > { %s177_s20 = sand.u32 (!%p172_p6), 1, %s604_s13  }
  0x21   : > { %175 = sbr.rel (%p172_p6) target bundleno = 317 (0x13d), region = 32  ;;  %s466_s21 = sshll.u32 (!%p172_p6), %s177_s20, 7 }
  0x22   : > { %s178_s22 = scalar_lea.sflag (!%p172_p6), [#allocation3], %s177_s20  ;;  %s716_s25 = scalar_lea.vmem (!%p172_p6), [#allocation2], %s466_s21 }
  0x26   : > { %595 = dma.done.wait (%p690_p7), %s178_s22, 2048  }
  0x27   : > { %597 = vsyncadd (%p690_p7), %s178_s22, 4294965248  ;;  %v625_v0 = vmov 0.0   ;;  %v626_v1 = vmov 0   ;;  %v234_v2 = vld [vmem:[%s716_s25 + $0x78] sm:$0xff]  ;;  %v233_v3 = vld [vmem:[%s716_s25 + $0x70] sm:$0xff]  ;;  %vm242_vm0 = vcmask 523264  }
  0x28   : > { %310 = vmatprep.mubr.f32.mxu0 %v625_v0  ;;  %533 = vset.pattern.permute.xlu0 %v626_v1  ;;  %v232_v4 = vld [vmem:[%s716_s25 + $0x68] sm:$0xff]  ;;  %v231_v5 = vld [vmem:[%s716_s25 + $0x60] sm:$0xff]  ;;  %v230_v6 = vld [vmem:[%s716_s25 + $0x58] sm:$0xff]  ;;  %vm317_vm1 = vcmask 1042432   ;;  %p210_p7 = scmp.lt.s32.totalorder %s612_s15, 1 }
  0x29   : > { %262 = vmatprep.subr.mxu0 %v234_v2  ;;  %v229_v7 = vld [vmem:[%s716_s25 + $0x50] sm:$0xff]  ;;  %v228_v8 = vld [vmem:[%s716_s25 + $0x48] sm:$0xff]  ;;  %v227_v9 = vld [vmem:[%s716_s25 + $0x40] sm:$0xff] }
  0x2a   : > { %263 = vmatpush1.msra.mxu0 %v233_v3  ;;  %v236_v10 = vld [vmem:[%s773_s2] sm:$0x7]  ;;  %v226_v11 = vld [vmem:[%s716_s25 + $0x38] sm:$0xff]  ;;  %v225_v12 = vld [vmem:[%s716_s25 + $0x30] sm:$0xff]  ;;  %s786_s15 = smov (!%p210_p7, %s612_s15), 1 }
  0x2b   : > { %264 = vmatprep.subr.mxu0 %v232_v4  ;;  %239 = vperm.xlu0 %533, %v236_v10   ;;  %v224_v13 = vld [vmem:[%s716_s25 + $0x28] sm:$0xff]  ;;  %v223_v14 = vld [vmem:[%s716_s25 + $0x20] sm:$0xff]  ;;  %v222_v15 = vld [vmem:[%s716_s25 + $0x18] sm:$0xff]  ;;  %s473_s29 = sshll.u32 %s786_s15, 3 }
  0x2c   : > { %265 = vmatpush1.msra.mxu0 %v231_v5  ;;  %v221_v16 = vld [vmem:[%s716_s25 + $0x10] sm:$0xff]  ;;  %v220_v17 = vld [vmem:[%s716_s25 + $0x8] sm:$0xff]  ;;  %v219_v18 = vld [vmem:[%s716_s25] sm:$0xff]  ;;  %s217_s5 = scalar_lea.vmem %s774_s3, %s473_s29 }
  0x2d   : > { %266 = vmatprep.subr.mxu0 %v230_v6  ;;  %v235_v19 = vld [vmem:[%s772_s1] sm:$0x7] }
  0x2e   : > { %267 = vmatpush1.msra.mxu0 %v229_v7 }
  0x2f   : > { %268 = vmatprep.subr.mxu0 %v228_v8 }
  0x30   : > { %269 = vmatpush1.msra.mxu0 %v227_v9 }
  0x31   : > { %270 = vmatprep.subr.mxu0 %v226_v11 }
  0x32   : > { %271 = vmatpush1.msra.mxu0 %v225_v12 }
  0x33   : > { %272 = vmatprep.subr.mxu0 %v224_v13 }
  0x34   : > { %273 = vmatpush1.msra.mxu0 %v223_v14 }
  0x35   : > { %274 = vmatprep.subr.mxu0 %v222_v15 }
  0x36   : > { %275 = vmatpush1.msra.mxu0 %v221_v16 }
  0x37   : > { %276 = vmatprep.subr.mxu0 %v220_v17 }
  0x38   : > { %277 = vmatpush1.msra.mxu0 %v219_v18 }
  0x39   : > { %469 = vmatmul.mubr.msk.f32.vlgmr.msra.gmra.mxu0 %vm242_vm0, %v235_v19 }
  0xa6   : > { %v240_v20 = vpop.permute.xlu0 %239 }
  0xf9   : > { %v312_v21 = vpop.f32.mrf.mxu0 }
  0xfa   : > { %v313_v22 = vadd.f32 %v312_v21, %v240_v20 }
  0xfb   : > { %v314_v23 = vpop.f32.mrf.mxu0 }
  0xfc   : > { %v318_v24 = vsel %vm317_vm1, %v313_v22, -inf  ;;  %v315_v25 = vadd.f32 %v314_v23, %v240_v20 }
  0xfd   : > { %v319_v26 = vrot.slane %v318_v24, 4 }
  0xfe   : > { %v325_v27 = vsel %vm317_vm1, %v315_v25, -inf }
  0xff   : > { %v320_v28 = vmax.f32 %v318_v24, %v319_v26  ;;  %v326_v29 = vrot.slane %v325_v27, 4 }
 0x101   : > { %v321_v30 = vrot.slane %v320_v28, 2  ;;  %v327_v31 = vmax.f32 %v325_v27, %v326_v29 }
 0x103   : > { %v322_v32 = vmax.f32 %v320_v28, %v321_v30  ;;  %v328_v33 = vrot.slane %v327_v31, 2 }
 0x105   : > { %v323_v34 = vrot.slane %v322_v32, 1  ;;  %v329_v35 = vmax.f32 %v327_v31, %v328_v33 }
 0x107   : > { %v324_v36 = vmax.f32 %v322_v32, %v323_v34  ;;  %v330_v37 = vrot.slane %v329_v35, 1 }
 0x109   : > { %v332_v38 = vsub.f32 %v313_v22, %v324_v36  ;;  %v331_v39 = vmax.f32 %v329_v35, %v330_v37 }
 0x10b   : > { %v334_v40 = vmul.f32 1.442695, %v332_v38  ;;  %v333_v41 = vsub.f32 %v315_v25, %v331_v39 }
 0x10d   : > { %534 = vpow2.f32 %v334_v40  ;;  %v336_v42 = vmul.f32 1.442695, %v333_v41 }
 0x10f   : > { %536 = vpow2.f32 %v336_v42 }
 0x11a   : > { %v535_v43 = vpop.eup %534 }
 0x11b   : > { %v338_v44 = vsel %vm317_vm1, %v535_v43, 0.0 }
 0x11c   : > { %v537_v45 = vpop.eup %536  ;;  %v339_v46 = vrot.slane %v338_v44, 4 }
 0x11d   : > { %v345_v47 = vsel %vm317_vm1, %v537_v45, 0.0 }
 0x11e   : > { %v340_v48 = vadd.f32 %v339_v46, %v338_v44  ;;  %v346_v49 = vrot.slane %v345_v47, 4 }
 0x120   : > { %v341_v50 = vrot.slane %v340_v48, 2  ;;  %v347_v51 = vadd.f32 %v346_v49, %v345_v47 }
 0x122   : > { %v342_v52 = vadd.f32 %v341_v50, %v340_v48  ;;  %v348_v53 = vrot.slane %v347_v51, 2 }
 0x124   : > { %v343_v54 = vrot.slane %v342_v52, 1  ;;  %v349_v55 = vadd.f32 %v348_v53, %v347_v51 }
 0x126   : > { %v344_v56 = vadd.f32 %v343_v54, %v342_v52  ;;  %v350_v57 = vrot.slane %v349_v55, 1 }
 0x128   : > { %538 = vrcp.f32 %v344_v56  ;;  %v351_v58 = vadd.f32 %v350_v57, %v349_v55 }
 0x12a   : > { %540 = vrcp.f32 %v351_v58 }
 0x135   : > { %v539_v59 = vpop.eup %538 }
 0x136   : > { %v356_v61 = vmul.f32 %v539_v59, %v535_v43 }
 0x137   : > { %v541_v60 = vpop.eup %540 }
 0x138   : > { %v357_v62 = vmul.f32 %v541_v60, %v537_v45 }
 0x13a   : > { %v360_v63 = vcombine.low %v356_v61, %v357_v62 }
 0x13c   : > { %362 = vst [vmem:[%s217_s5] sm:$0x77] %v360_v63 }
 0x13d PF: > { %s16_s17 = sadd.s32 1, %s620_s17   ;;  %s778_s12 = smov %s604_s13 }
 0x13e   : > { %p13_p8 = scmp.ge.s32.totalorder %s16_s17, 4   ;;  %s779_s13 = smov %s608_s14 }
 0x13f   : > { %s780_s14 = smov %s696_s24  ;;  %s781_s15 = smov %s616_s16 }
 0x140   : > { %s782_s16 = smov %s784_s19  ;;  %15 = sbr.rel (!%p13_p8) target bundleno = 4 (0x4), region = 72 }
 0x145   :  { %393 = vsyncpa [#allocation3], 1 }
 0x146   :  { %395 = vsyncpa [#allocation3 + $0x1], 1 }

</bundles_post_ra>
